<compile_context>
chip_gen: v5e
topology: v5e:2x2
jax: 0.10.0
libtpu: 0.0.40
codegen_flags: <defaults>
</compile_context>

<pallas_src>
import functools

import jax
import jax.numpy as jnp
from jax import lax
from jax.experimental import pallas as pl
from jax.experimental.pallas import tpu as pltpu


def _round_up(x, m):
    return (x + m - 1) // m * m


def _cdiv(a, b):
    return (a + b - 1) // b


def _pad2(a, rows, cols):
    pr, pc = rows - a.shape[0], cols - a.shape[1]
    if pr == 0 and pc == 0:
        return a
    return jnp.pad(a, ((0, pr), (0, pc)))


def _pick_time_chunk(seq, max_chunk=32):
    """Large chunk (amortizes ~0.35us/step grid overhead); never falls back to 1."""
    if seq <= max_chunk:
        return seq
    best, best_pad = max_chunk, (-seq) % max_chunk
    for c in range(max_chunk, max_chunk // 2, -1):
        pad = (-seq) % c
        if pad < best_pad:
            best, best_pad = c, pad
            if pad == 0:
                break
    return best


def _pick_col_chunks(nhid_p, max_chunks=4):
    """Split W_hh output columns (>=256 wide, 128-aligned) to overlap MXU/EUP."""
    blocks = nhid_p // 128
    for n in range(min(max_chunks, blocks), 1, -1):
        if blocks % n == 0 and nhid_p // n >= 256:
            return n
    return 1


def _physical_vmem_bytes():
    try:
        return int(pltpu.get_tpu_info().vmem_capacity_bytes)
    except Exception:
        return 64 << 20  # v7x per-TensorCore VMEM (smallest across generations)


def _vmem_limit(est_bytes):
    cap = _physical_vmem_bytes()
    want = int(est_bytes) + (4 << 20)            # margin for compiler scratch
    floor = min(32 << 20, cap)                   # never go below the usual default
    return int(min(max(want, floor), cap))


# ----------------------------------------------------------------------------
# Tiled matmul + bias:  (N, K) @ (K, M) + b  ->  (N, M).   Used for the decoder.
# Column blocks are the OUTER grid dim, so each (K, tn) weight block is DMA'd
# exactly once; with N small enough for one row block the weight is streamed
# from HBM exactly once per call.
# ----------------------------------------------------------------------------
def _matmul_bias_kernel(x_ref, w_ref, b_ref, o_ref):
    o_ref[...] = (jnp.dot(x_ref[...], w_ref[...],
                          preferred_element_type=jnp.float32)
                  + b_ref[...]).astype(o_ref.dtype)


def matmul_bias(x, w_t, b, *, compute_dtype=jnp.bfloat16, out_dtype=jnp.float32,
                tm_max=512, tn_max=512):
    """x: (N, K); w_t: (K, M) already transposed; b: (M,) -> (N, M)."""
    n, k = x.shape
    k2, m = w_t.shape
    assert k == k2

    n8 = _round_up(n, 8)
    n_row_blocks = _cdiv(n8, tm_max)
    tm = _round_up(_cdiv(n8, n_row_blocks), 8)
    n_p = tm * n_row_blocks
    tn = min(tn_max, _round_up(m, 128))
    m_p = _round_up(m, tn)

    x_p = _pad2(x, n_p, k).astype(compute_dtype)
    w_p = _pad2(w_t, k, m_p).astype(compute_dtype)
    b_p = jnp.pad(b, (0, m_p - m)).reshape(1, m_p).astype(jnp.float32)

    cbytes = jnp.dtype(compute_dtype).itemsize
    est = (2 * tm * k * cbytes + 2 * k * tn * cbytes
           + 2 * tn * 4 + 2 * tm * tn * jnp.dtype(out_dtype).itemsize)

    out = pl.pallas_call(
        _matmul_bias_kernel,
        out_shape=jax.ShapeDtypeStruct((n_p, m_p), out_dtype),
        grid_spec=pltpu.PrefetchScalarGridSpec(
            num_scalar_prefetch=0,
            # Outer = weight column blocks (each DMA'd once); inner = row blocks.
            grid=(m_p // tn, n_p // tm),
            in_specs=[
                pl.BlockSpec((tm, k), lambda j, i: (i, 0)),    # activations
                pl.BlockSpec((k, tn), lambda j, i: (0, j)),    # pre-transposed weight
                pl.BlockSpec((1, tn), lambda j, i: (0, j)),    # bias
            ],
            out_specs=pl.BlockSpec((tm, tn), lambda j, i: (i, j)),
        ),
        compiler_params=pltpu.CompilerParams(
            dimension_semantics=("parallel", "parallel"),
            vmem_limit_bytes=_vmem_limit(est)),
    )(x_p, w_p, b_p)
    return out[:n, :m]


# ----------------------------------------------------------------------------
# Fused per-layer RNN kernel: grid over time-chunks.  Each grid step:
#   1. (t_chunk*bsz_p, in_dim) @ W_ih^T + bias  (one MXU matmul, hoisted)
#   2. serial recurrence over t_chunk steps:  h = act(xp[t] + h @ W_hh^T)
# W_ih^T / W_hh^T live in single-buffered VMEM scratch (DMA'd once at step 0);
# the hidden state is carried in VMEM scratch across grid steps.
# ----------------------------------------------------------------------------
def _rnn_fused_kernel(x_ref, h0_ref, b_ref, wih_hbm, whh_hbm,
                      out_ref, hlast_ref,
                      wih_scr, whh_scr, h_scr, buf_scr, dma_sem,
                      *, nonlinearity, bsz_p, t_chunk, seq_valid, seq_padded,
                      n_col_chunks):
    c = pl.program_id(0)
    nhid_p = whh_scr.shape[0]

    @pl.when(c == 0)
    def _():
        # One-shot DMA of grid-invariant weights into single-buffered scratch
        # (avoids the 2x VMEM cost of default BlockSpec double-buffering).
        ih_cp = pltpu.make_async_copy(wih_hbm, wih_scr, dma_sem.at[0])
        hh_cp = pltpu.make_async_copy(whh_hbm, whh_scr, dma_sem.at[1])
        ih_cp.start()
        hh_cp.start()
        h_scr[...] = h0_ref[...].astype(jnp.float32)
        ih_cp.wait()
        hh_cp.wait()

    # Hoisted chunk input projection: one MXU matmul covering t_chunk timesteps.
    buf_scr[...] = (jnp.dot(x_ref[...], wih_scr[...],
                            preferred_element_type=jnp.float32)
                    + b_ref[...])

    whh = whh_scr[...]
    if nonlinearity == "tanh":
        act = jnp.tanh
    else:  # "relu"
        act = lambda z: jnp.maximum(z, 0.0)

    def step(t, h):
        row0 = pl.multiple_of(t * bsz_p, 8)
        xt = buf_scr[pl.ds(row0, bsz_p), :]              # (bsz_p, nhid_p) f32
        h_c = h.astype(whh.dtype)                        # MXU operand dtype
        if n_col_chunks == 1:
            h_new = act(xt + jnp.dot(h_c, whh,
                                     preferred_element_type=jnp.float32))
        else:
            # Column-chunked so EUP tanh of chunk j overlaps MXU matmul of j+1
            # (different VLIW slots) on the serial critical path.
            cc = nhid_p // n_col_chunks
            parts = []
            for j in range(n_col_chunks):
                pre_j = xt[:, j * cc:(j + 1) * cc] + jnp.dot(
                    h_c, whh[:, j * cc:(j + 1) * cc],
                    preferred_element_type=jnp.float32)
                parts.append(act(pre_j))
            h_new = jnp.concatenate(parts, axis=-1)
        # Stage output in the same buffer (rows already consumed for this step).
        buf_scr[pl.ds(row0, bsz_p), :] = h_new
        if seq_padded != seq_valid:
            # Padded tail timesteps must not corrupt the carried hidden state.
            h_new = jnp.where(c * t_chunk + t < seq_valid, h_new, h)
        return h_new

    h = lax.fori_loop(0, t_chunk, step, h_scr[...], unroll=True)
    h_scr[...] = h

    # One lane-dense writeback per chunk.
    out_ref[...] = buf_scr[...].astype(out_ref.dtype)

    @pl.when(c == pl.num_programs(0) - 1)
    def _():
        hlast_ref[...] = h


def rnn_layer_fused(x2d, h0, w_ih_t, w_hh_t, bias, nonlinearity, *,
                    bsz_p, t_chunk, seq_valid, seq_padded, out_dtype):
    """x2d: (seq_p*bsz_p, in_dim_p); h0: (bsz_p, nhid_p); weights pre-transposed."""
    rows, in_dim_p = x2d.shape
    nhid_p = w_hh_t.shape[0]
    n_chunks = seq_padded // t_chunk
    rows_per_chunk = t_chunk * bsz_p
    n_col_chunks = _pick_col_chunks(nhid_p)

    kernel = functools.partial(
        _rnn_fused_kernel, nonlinearity=nonlinearity, bsz_p=bsz_p,
        t_chunk=t_chunk, seq_valid=seq_valid, seq_padded=seq_padded,
        n_col_chunks=n_col_chunks)

    cbytes = jnp.dtype(x2d.dtype).itemsize
    est = (2 * rows_per_chunk * in_dim_p * cbytes            # x in (double-buffered)
           + 2 * rows_per_chunk * nhid_p * jnp.dtype(out_dtype).itemsize  # out
           + 4 * bsz_p * nhid_p * 4 + 2 * nhid_p * 4         # h0 / hlast / bias
           + in_dim_p * nhid_p * cbytes                      # W_ih scratch (single)
           + nhid_p * nhid_p * cbytes                        # W_hh scratch (single)
           + bsz_p * nhid_p * 4                              # hidden carry
           + rows_per_chunk * nhid_p * 4)                    # projection/out staging

    out, h_last = pl.pallas_call(
        kernel,
        out_shape=(jax.ShapeDtypeStruct((rows, nhid_p), out_dtype),
                   jax.ShapeDtypeStruct((bsz_p, nhid_p), jnp.float32)),
        grid_spec=pltpu.PrefetchScalarGridSpec(
            num_scalar_prefetch=0,
            grid=(n_chunks,),
            in_specs=[
                pl.BlockSpec((rows_per_chunk, in_dim_p), lambda c: (c, 0)),  # x chunk
                pl.BlockSpec((bsz_p, nhid_p), lambda c: (0, 0)),             # h0
                pl.BlockSpec((1, nhid_p), lambda c: (0, 0)),                 # fused bias
                pl.BlockSpec(memory_space=pl.ANY),   # W_ih^T stays in HBM; DMA'd once
                pl.BlockSpec(memory_space=pl.ANY),   # W_hh^T stays in HBM; DMA'd once
            ],
            out_specs=[
                pl.BlockSpec((rows_per_chunk, nhid_p), lambda c: (c, 0)),    # outputs
                pl.BlockSpec((bsz_p, nhid_p), lambda c: (0, 0)),             # last hidden
            ],
            scratch_shapes=[
                pltpu.VMEM((in_dim_p, nhid_p), x2d.dtype),      # W_ih^T resident
                pltpu.VMEM((nhid_p, nhid_p), x2d.dtype),        # W_hh^T resident
                pltpu.VMEM((bsz_p, nhid_p), jnp.float32),       # hidden state carry
                pltpu.VMEM((rows_per_chunk, nhid_p), jnp.float32),  # xp / out staging
                pltpu.SemaphoreType.DMA((2,)),
            ]),
        compiler_params=pltpu.CompilerParams(
            dimension_semantics=("arbitrary",),
            vmem_limit_bytes=_vmem_limit(est)),
    )(x2d, h0, bias, w_ih_t, w_hh_t)
    return out, h_last


# ----------------------------------------------------------------------------
# Full model forward
# ----------------------------------------------------------------------------
def rnn_nlp_forward(params, tokens, hidden, nonlinearity, *,
                    compute_dtype=jnp.bfloat16):
    """tokens: (seq, bsz) int32; hidden: (nlayers, bsz, nhid).

    compute_dtype=bf16 uses the MXU natively (v6e/v7x) with f32 accumulation.
    Pass jnp.float32 if bit-for-bit f32 matmul behaviour is preferred.
    """
    seq, bsz = tokens.shape
    enc_w = params["encoder_weight"]
    ntoken, ninp = enc_w.shape
    nhid = params["rnn_layers"][0]["w_hh"].shape[0]

    bsz_p = _round_up(bsz, 8)
    nhid_p = _round_up(nhid, 128)
    ninp_p = _round_up(ninp, 128)
    t_chunk = _pick_time_chunk(seq)
    seq_p = _round_up(seq, t_chunk)

    # Embedding lookup (plain JAX gather; dropout == identity in eval mode).
    emb = jnp.take(enc_w, tokens, axis=0)                        # (seq, bsz, ninp)
    x = jnp.pad(emb, ((0, seq_p - seq), (0, bsz_p - bsz), (0, ninp_p - ninp)))
    x = x.reshape(seq_p * bsz_p, ninp_p).astype(compute_dtype)   # 2-D, lane-dense

    new_hidden = []
    in_dim_p = ninp_p
    for l, layer in enumerate(params["rnn_layers"]):
        # Host-side (once per call): pre-transpose, fuse biases, pad, cast.
        w_ih_t = _pad2(layer["w_ih"].T, in_dim_p, nhid_p).astype(compute_dtype)
        w_hh_t = _pad2(layer["w_hh"].T, nhid_p, nhid_p).astype(compute_dtype)
        bias = jnp.pad(layer["b_ih"] + layer["b_hh"],
                       (0, nhid_p - nhid)).reshape(1, nhid_p).astype(jnp.float32)
        h0 = _pad2(hidden[l], bsz_p, nhid_p).astype(jnp.float32)

        x, h_last = rnn_layer_fused(
            x, h0, w_ih_t, w_hh_t, bias, nonlinearity,
            bsz_p=bsz_p, t_chunk=t_chunk, seq_valid=seq, seq_padded=seq_p,
            out_dtype=compute_dtype)
        new_hidden.append(h_last[:bsz, :nhid])
        in_dim_p = nhid_p

    new_hidden = jnp.stack(new_hidden, axis=0)                   # (nlayers, bsz, nhid)

    # Decoder: slice off padded time & batch rows first (saves padded FLOPs and
    # the corresponding share of the dominant (seq*bsz, ntoken) writeback).
    dec_in = (x.reshape(seq_p, bsz_p, nhid_p)[:seq, :bsz, :]
              .reshape(seq * bsz, nhid_p))
    dec_w_t = _pad2(params["decoder_weight"].T, nhid_p, ntoken)  # (nhid_p, ntoken)
    dec = matmul_bias(dec_in, dec_w_t, params["decoder_bias"],
                      compute_dtype=compute_dtype, out_dtype=jnp.float32)
    decoded = dec.reshape(seq, bsz, ntoken)
    return decoded, new_hidden


# ----------------------------------------------------------------------------
# Deterministic parameter init (mirrors the PyTorch __init__ shapes/ranges).
# ----------------------------------------------------------------------------
def init_params(key, ntoken, ninp, nhid, nlayers):
    initrange = 0.1
    stdv = 1.0 / jnp.sqrt(jnp.float32(nhid))
    keys = jax.random.split(key, 2 + 4 * nlayers)
    params = {
        "encoder_weight": jax.random.uniform(
            keys[0], (ntoken, ninp), jnp.float32, -initrange, initrange),
        "decoder_weight": jax.random.uniform(
            keys[1], (ntoken, nhid), jnp.float32, -initrange, initrange),
        "decoder_bias": jnp.zeros((ntoken,), jnp.float32),
        "rnn_layers": [],
    }
    for l in range(nlayers):
        in_dim = ninp if l == 0 else nhid
        k = keys[2 + 4 * l: 2 + 4 * (l + 1)]
        params["rnn_layers"].append({
            "w_ih": jax.random.uniform(k[0], (nhid, in_dim), jnp.float32, -stdv, stdv),
            "w_hh": jax.random.uniform(k[1], (nhid, nhid), jnp.float32, -stdv, stdv),
            "b_ih": jax.random.uniform(k[2], (nhid,), jnp.float32, -stdv, stdv),
            "b_hh": jax.random.uniform(k[3], (nhid,), jnp.float32, -stdv, stdv),
        })
    return params


# Pure-JAX reference (same matmul operand dtype as the kernels for a tight check).
def rnn_nlp_reference(params, tokens, hidden, nonlinearity,
                      compute_dtype=jnp.float32):
    def mm(a, b):
        return jnp.dot(a.astype(compute_dtype), b.astype(compute_dtype),
                       preferred_element_type=jnp.float32)

    emb = jnp.take(params["encoder_weight"], tokens, axis=0)
    nl = jnp.tanh if nonlinearity == "tanh" else (lambda z: jnp.maximum(z, 0.0))
    x = emb
    new_hidden = []
    for l, layer in enumerate(params["rnn_layers"]):
        h = hidden[l]
        outs = []
        for t in range(x.shape[0]):
            h = nl(mm(x[t], layer["w_ih"].T) + layer["b_ih"]
                   + mm(h, layer["w_hh"].T) + layer["b_hh"])
            outs.append(h)
        x = jnp.stack(outs, axis=0)
        new_hidden.append(h)
    new_hidden = jnp.stack(new_hidden, axis=0)
    seq, bsz, nhid = x.shape
    dec = (mm(x.reshape(seq * bsz, nhid), params["decoder_weight"].T)
           + params["decoder_bias"])
    return dec.reshape(seq, bsz, -1), new_hidden


if __name__ == "__main__":
    nonlinearity = "tanh"
    ntoken, ninp, nhid, nlayers = 64, 32, 32, 2
    seq, bsz = 8, 2

    key = jax.random.PRNGKey(0)
    k_params, k_tok = jax.random.split(key)
    params = init_params(k_params, ntoken, ninp, nhid, nlayers)

    tokens = jax.random.randint(k_tok, (seq, bsz), 0, ntoken, dtype=jnp.int32)
    hidden0 = jnp.zeros((nlayers, bsz, nhid), jnp.float32)  # init_hidden

    decoded, hidden = rnn_nlp_forward(params, tokens, hidden0, nonlinearity,
                                      compute_dtype=jnp.bfloat16)
    decoded = jax.block_until_ready(decoded)
    hidden = jax.block_until_ready(hidden)

    assert decoded.shape == (seq, bsz, ntoken)
    assert hidden.shape == (nlayers, bsz, nhid)

    # Numerical check against a pure-JAX reference using the same bf16 operand
    # casting (the kernels accumulate in f32; differences are rounding-level).
    ref_dec, ref_hid = rnn_nlp_reference(params, tokens, hidden0, nonlinearity,
                                         compute_dtype=jnp.bfloat16)
    assert jnp.allclose(decoded, ref_dec, atol=1e-2, rtol=1e-2), \
        float(jnp.max(jnp.abs(decoded - ref_dec)))
    assert jnp.allclose(hidden, ref_hid, atol=1e-2, rtol=1e-2), \
        float(jnp.max(jnp.abs(hidden - ref_hid)))

    print("KERNEL_OK")
</pallas_src>

<mosaic_0001>
module attributes {stable_mosaic.version = 11 : i64} {
  func.func @_rnn_fused_kernel(%arg0: i32, %arg1: memref<64x128xbf16, #tpu.memory_space<vmem>>, %arg2: memref<8x128xf32, #tpu.memory_space<vmem>>, %arg3: memref<1x128xf32, #tpu.memory_space<vmem>>, %arg4: memref<128x128xbf16, #tpu.memory_space<any>>, %arg5: memref<128x128xbf16, #tpu.memory_space<any>>, %arg6: memref<64x128xbf16, #tpu.memory_space<vmem>>, %arg7: memref<8x128xf32, #tpu.memory_space<vmem>>, %arg8: memref<128x128xbf16, #tpu.memory_space<vmem>>, %arg9: memref<128x128xbf16, #tpu.memory_space<vmem>>, %arg10: memref<8x128xf32, #tpu.memory_space<vmem>>, %arg11: memref<64x128xf32, #tpu.memory_space<vmem>>, %arg12: memref<2x!tpu.dma_semaphore, #tpu.memory_space<semaphore_mem>>) attributes {dimension_semantics = [#tpu.dimension_semantics<arbitrary>], iteration_bounds = array<i64: 1>, scalar_prefetch = 0 : i64, scratch_operands = 5 : i64, tpu.core_type = #tpu.core_type<tc>, window_params = [{transform_indices = @transform_0, window_bounds = array<i64: 64, 128>}, {pipeline_mode = #tpu.pipeline_mode<synchronous>, transform_indices = @transform_1, window_bounds = array<i64: 8, 128>}, {pipeline_mode = #tpu.pipeline_mode<synchronous>, transform_indices = @transform_2, window_bounds = array<i64: 1, 128>}, {}, {}, {transform_indices = @transform_5, window_bounds = array<i64: 64, 128>}, {pipeline_mode = #tpu.pipeline_mode<synchronous>, transform_indices = @transform_6, window_bounds = array<i64: 8, 128>}]} {
    %c0_i32 = arith.constant 0 : i32
    %0 = arith.cmpi eq, %arg0, %c0_i32 : i32
    %1 = arith.extui %0 : i1 to i32
    %c0_i32_0 = arith.constant 0 : i32
    %2 = arith.cmpi ne, %1, %c0_i32_0 : i32
    scf.if %2 {
      %c0_i32_53 = arith.constant 0 : i32
      %99 = tpu.memref_slice %arg12[%c0_i32_53] : memref<2x!tpu.dma_semaphore, #tpu.memory_space<semaphore_mem>> -> memref<1x!tpu.dma_semaphore, #tpu.memory_space<semaphore_mem>>
      %100 = tpu.memref_squeeze %99 : memref<1x!tpu.dma_semaphore, #tpu.memory_space<semaphore_mem>> -> memref<!tpu.dma_semaphore, #tpu.memory_space<semaphore_mem>>
      tpu.enqueue_dma source(%arg4 : memref<128x128xbf16, #tpu.memory_space<any>>) target(%arg8 : memref<128x128xbf16, #tpu.memory_space<vmem>>) target_semaphore(%100 : memref<!tpu.dma_semaphore, #tpu.memory_space<semaphore_mem>>)
      %c1_i32_54 = arith.constant 1 : i32
      %101 = tpu.memref_slice %arg12[%c1_i32_54] : memref<2x!tpu.dma_semaphore, #tpu.memory_space<semaphore_mem>> -> memref<1x!tpu.dma_semaphore, #tpu.memory_space<semaphore_mem>>
      %102 = tpu.memref_squeeze %101 : memref<1x!tpu.dma_semaphore, #tpu.memory_space<semaphore_mem>> -> memref<!tpu.dma_semaphore, #tpu.memory_space<semaphore_mem>>
      tpu.enqueue_dma source(%arg5 : memref<128x128xbf16, #tpu.memory_space<any>>) target(%arg9 : memref<128x128xbf16, #tpu.memory_space<vmem>>) target_semaphore(%102 : memref<!tpu.dma_semaphore, #tpu.memory_space<semaphore_mem>>)
      %c0_55 = arith.constant 0 : index
      %c0_56 = arith.constant 0 : index
      %103 = vector.load %arg2[%c0_55, %c0_56] : memref<8x128xf32, #tpu.memory_space<vmem>>, vector<8x128xf32>
      %c0_57 = arith.constant 0 : index
      %c0_58 = arith.constant 0 : index
      %104 = vector.load %arg10[%c0_57, %c0_58] : memref<8x128xf32, #tpu.memory_space<vmem>>, vector<8x128xf32>
      tpu.vector_store %arg10[%c0_57, %c0_58], %103 {strides = array<i32>} : memref<8x128xf32, #tpu.memory_space<vmem>>, vector<8x128xf32>,
      %c0_i32_59 = arith.constant 0 : i32
      %105 = tpu.memref_slice %arg12[%c0_i32_59] : memref<2x!tpu.dma_semaphore, #tpu.memory_space<semaphore_mem>> -> memref<1x!tpu.dma_semaphore, #tpu.memory_space<semaphore_mem>>
      %106 = tpu.memref_squeeze %105 : memref<1x!tpu.dma_semaphore, #tpu.memory_space<semaphore_mem>> -> memref<!tpu.dma_semaphore, #tpu.memory_space<semaphore_mem>>
      tpu.wait_dma2 semaphore(%106 : memref<!tpu.dma_semaphore, #tpu.memory_space<semaphore_mem>>) src(%arg4 : memref<128x128xbf16, #tpu.memory_space<any>>) dst(%arg8 : memref<128x128xbf16, #tpu.memory_space<vmem>>)
      %c1_i32_60 = arith.constant 1 : i32
      %107 = tpu.memref_slice %arg12[%c1_i32_60] : memref<2x!tpu.dma_semaphore, #tpu.memory_space<semaphore_mem>> -> memref<1x!tpu.dma_semaphore, #tpu.memory_space<semaphore_mem>>
      %108 = tpu.memref_squeeze %107 : memref<1x!tpu.dma_semaphore, #tpu.memory_space<semaphore_mem>> -> memref<!tpu.dma_semaphore, #tpu.memory_space<semaphore_mem>>
      tpu.wait_dma2 semaphore(%108 : memref<!tpu.dma_semaphore, #tpu.memory_space<semaphore_mem>>) src(%arg5 : memref<128x128xbf16, #tpu.memory_space<any>>) dst(%arg9 : memref<128x128xbf16, #tpu.memory_space<vmem>>)
    } else {
    }
    %c0 = arith.constant 0 : index
    %c0_1 = arith.constant 0 : index
    %3 = vector.load %arg1[%c0, %c0_1] : memref<64x128xbf16, #tpu.memory_space<vmem>>, vector<64x128xbf16>
    %c0_2 = arith.constant 0 : index
    %c0_3 = arith.constant 0 : index
    %4 = vector.load %arg8[%c0_2, %c0_3] : memref<128x128xbf16, #tpu.memory_space<vmem>>, vector<128x128xbf16>
    %cst = arith.constant dense<0.000000e+00> : vector<64x128xf32>
    %5 = tpu.matmul %3, %4, %cst {dimension_numbers = #tpu.dot_dimension_numbers<[1], [0], [0], [1], [0, 0, 1, 1], [], []>} : vector<64x128xbf16>, vector<128x128xbf16>, vector<64x128xf32> -> vector<64x128xf32>
    %c0_4 = arith.constant 0 : index
    %c0_5 = arith.constant 0 : index
    %6 = vector.load %arg3[%c0_4, %c0_5] : memref<1x128xf32, #tpu.memory_space<vmem>>, vector<1x128xf32>
    %7 = vector.broadcast %6 : vector<1x128xf32> to vector<64x128xf32>
    %8 = arith.addf %5, %7 : vector<64x128xf32>
    %c0_6 = arith.constant 0 : index
    %c0_7 = arith.constant 0 : index
    %9 = vector.load %arg11[%c0_6, %c0_7] : memref<64x128xf32, #tpu.memory_space<vmem>>, vector<64x128xf32>
    tpu.vector_store %arg11[%c0_6, %c0_7], %8 {strides = array<i32>} : memref<64x128xf32, #tpu.memory_space<vmem>>, vector<64x128xf32>,
    %c0_8 = arith.constant 0 : index
    %c0_9 = arith.constant 0 : index
    %10 = vector.load %arg9[%c0_8, %c0_9] : memref<128x128xbf16, #tpu.memory_space<vmem>>, vector<128x128xbf16>
    %c0_10 = arith.constant 0 : index
    %c0_11 = arith.constant 0 : index
    %11 = vector.load %arg10[%c0_10, %c0_11] : memref<8x128xf32, #tpu.memory_space<vmem>>, vector<8x128xf32>
    %c0_i32_12 = arith.constant 0 : i32
    %c8_i32 = arith.constant 8 : i32
    %12 = arith.muli %c0_i32_12, %c8_i32 : i32
    %13 = tpu.assume_multiple %12, 8 : i32
    %14 = arith.index_cast %13 : i32 to index
    %c0_13 = arith.constant 0 : index
    %15 = vector.load %arg11[%14, %c0_13] : memref<64x128xf32, #tpu.memory_space<vmem>>, vector<8x128xf32>
    %16 = arith.truncf %11 : vector<8x128xf32> to vector<8x128xbf16>
    %cst_14 = arith.constant dense<0.000000e+00> : vector<8x128xf32>
    %17 = tpu.matmul %16, %10, %cst_14 {dimension_numbers = #tpu.dot_dimension_numbers<[1], [0], [0], [1], [0, 0, 1, 1], [], []>} : vector<8x128xbf16>, vector<128x128xbf16>, vector<8x128xf32> -> vector<8x128xf32>
    %18 = arith.addf %15, %17 : vector<8x128xf32>
    %19 = math.tanh %18 : vector<8x128xf32>
    %20 = arith.index_cast %13 : i32 to index
    %c0_15 = arith.constant 0 : index
    %21 = vector.load %arg11[%20, %c0_15] : memref<64x128xf32, #tpu.memory_space<vmem>>, vector<8x128xf32>
    tpu.vector_store %arg11[%20, %c0_15], %19 {strides = array<i32>} : memref<64x128xf32, #tpu.memory_space<vmem>>, vector<8x128xf32>,
    %c1_i32 = arith.constant 1 : i32
    %c8_i32_16 = arith.constant 8 : i32
    %22 = arith.muli %c1_i32, %c8_i32_16 : i32
    %23 = tpu.assume_multiple %22, 8 : i32
    %24 = arith.index_cast %23 : i32 to index
    %c0_17 = arith.constant 0 : index
    %25 = vector.load %arg11[%24, %c0_17] : memref<64x128xf32, #tpu.memory_space<vmem>>, vector<8x128xf32>
    %26 = arith.truncf %19 : vector<8x128xf32> to vector<8x128xbf16>
    %cst_18 = arith.constant dense<0.000000e+00> : vector<8x128xf32>
    %27 = tpu.matmul %26, %10, %cst_18 {dimension_numbers = #tpu.dot_dimension_numbers<[1], [0], [0], [1], [0, 0, 1, 1], [], []>} : vector<8x128xbf16>, vector<128x128xbf16>, vector<8x128xf32> -> vector<8x128xf32>
    %28 = arith.addf %25, %27 : vector<8x128xf32>
    %29 = math.tanh %28 : vector<8x128xf32>
    %30 = arith.index_cast %23 : i32 to index
    %c0_19 = arith.constant 0 : index
    %31 = vector.load %arg11[%30, %c0_19] : memref<64x128xf32, #tpu.memory_space<vmem>>, vector<8x128xf32>
    tpu.vector_store %arg11[%30, %c0_19], %29 {strides = array<i32>} : memref<64x128xf32, #tpu.memory_space<vmem>>, vector<8x128xf32>,
    %c2_i32 = arith.constant 2 : i32
    %c8_i32_20 = arith.constant 8 : i32
    %32 = arith.muli %c2_i32, %c8_i32_20 : i32
    %33 = tpu.assume_multiple %32, 8 : i32
    %34 = arith.index_cast %33 : i32 to index
    %c0_21 = arith.constant 0 : index
    %35 = vector.load %arg11[%34, %c0_21] : memref<64x128xf32, #tpu.memory_space<vmem>>, vector<8x128xf32>
    %36 = arith.truncf %29 : vector<8x128xf32> to vector<8x128xbf16>
    %cst_22 = arith.constant dense<0.000000e+00> : vector<8x128xf32>
    %37 = tpu.matmul %36, %10, %cst_22 {dimension_numbers = #tpu.dot_dimension_numbers<[1], [0], [0], [1], [0, 0, 1, 1], [], []>} : vector<8x128xbf16>, vector<128x128xbf16>, vector<8x128xf32> -> vector<8x128xf32>
    %38 = arith.addf %35, %37 : vector<8x128xf32>
    %39 = math.tanh %38 : vector<8x128xf32>
    %40 = arith.index_cast %33 : i32 to index
    %c0_23 = arith.constant 0 : index
    %41 = vector.load %arg11[%40, %c0_23] : memref<64x128xf32, #tpu.memory_space<vmem>>, vector<8x128xf32>
    tpu.vector_store %arg11[%40, %c0_23], %39 {strides = array<i32>} : memref<64x128xf32, #tpu.memory_space<vmem>>, vector<8x128xf32>,
    %c3_i32 = arith.constant 3 : i32
    %c8_i32_24 = arith.constant 8 : i32
    %42 = arith.muli %c3_i32, %c8_i32_24 : i32
    %43 = tpu.assume_multiple %42, 8 : i32
    %44 = arith.index_cast %43 : i32 to index
    %c0_25 = arith.constant 0 : index
    %45 = vector.load %arg11[%44, %c0_25] : memref<64x128xf32, #tpu.memory_space<vmem>>, vector<8x128xf32>
    %46 = arith.truncf %39 : vector<8x128xf32> to vector<8x128xbf16>
    %cst_26 = arith.constant dense<0.000000e+00> : vector<8x128xf32>
    %47 = tpu.matmul %46, %10, %cst_26 {dimension_numbers = #tpu.dot_dimension_numbers<[1], [0], [0], [1], [0, 0, 1, 1], [], []>} : vector<8x128xbf16>, vector<128x128xbf16>, vector<8x128xf32> -> vector<8x128xf32>
    %48 = arith.addf %45, %47 : vector<8x128xf32>
    %49 = math.tanh %48 : vector<8x128xf32>
    %50 = arith.index_cast %43 : i32 to index
    %c0_27 = arith.constant 0 : index
    %51 = vector.load %arg11[%50, %c0_27] : memref<64x128xf32, #tpu.memory_space<vmem>>, vector<8x128xf32>
    tpu.vector_store %arg11[%50, %c0_27], %49 {strides = array<i32>} : memref<64x128xf32, #tpu.memory_space<vmem>>, vector<8x128xf32>,
    %c4_i32 = arith.constant 4 : i32
    %c8_i32_28 = arith.constant 8 : i32
    %52 = arith.muli %c4_i32, %c8_i32_28 : i32
    %53 = tpu.assume_multiple %52, 8 : i32
    %54 = arith.index_cast %53 : i32 to index
    %c0_29 = arith.constant 0 : index
    %55 = vector.load %arg11[%54, %c0_29] : memref<64x128xf32, #tpu.memory_space<vmem>>, vector<8x128xf32>
    %56 = arith.truncf %49 : vector<8x128xf32> to vector<8x128xbf16>
    %cst_30 = arith.constant dense<0.000000e+00> : vector<8x128xf32>
    %57 = tpu.matmul %56, %10, %cst_30 {dimension_numbers = #tpu.dot_dimension_numbers<[1], [0], [0], [1], [0, 0, 1, 1], [], []>} : vector<8x128xbf16>, vector<128x128xbf16>, vector<8x128xf32> -> vector<8x128xf32>
    %58 = arith.addf %55, %57 : vector<8x128xf32>
    %59 = math.tanh %58 : vector<8x128xf32>
    %60 = arith.index_cast %53 : i32 to index
    %c0_31 = arith.constant 0 : index
    %61 = vector.load %arg11[%60, %c0_31] : memref<64x128xf32, #tpu.memory_space<vmem>>, vector<8x128xf32>
    tpu.vector_store %arg11[%60, %c0_31], %59 {strides = array<i32>} : memref<64x128xf32, #tpu.memory_space<vmem>>, vector<8x128xf32>,
    %c5_i32 = arith.constant 5 : i32
    %c8_i32_32 = arith.constant 8 : i32
    %62 = arith.muli %c5_i32, %c8_i32_32 : i32
    %63 = tpu.assume_multiple %62, 8 : i32
    %64 = arith.index_cast %63 : i32 to index
    %c0_33 = arith.constant 0 : index
    %65 = vector.load %arg11[%64, %c0_33] : memref<64x128xf32, #tpu.memory_space<vmem>>, vector<8x128xf32>
    %66 = arith.truncf %59 : vector<8x128xf32> to vector<8x128xbf16>
    %cst_34 = arith.constant dense<0.000000e+00> : vector<8x128xf32>
    %67 = tpu.matmul %66, %10, %cst_34 {dimension_numbers = #tpu.dot_dimension_numbers<[1], [0], [0], [1], [0, 0, 1, 1], [], []>} : vector<8x128xbf16>, vector<128x128xbf16>, vector<8x128xf32> -> vector<8x128xf32>
    %68 = arith.addf %65, %67 : vector<8x128xf32>
    %69 = math.tanh %68 : vector<8x128xf32>
    %70 = arith.index_cast %63 : i32 to index
    %c0_35 = arith.constant 0 : index
    %71 = vector.load %arg11[%70, %c0_35] : memref<64x128xf32, #tpu.memory_space<vmem>>, vector<8x128xf32>
    tpu.vector_store %arg11[%70, %c0_35], %69 {strides = array<i32>} : memref<64x128xf32, #tpu.memory_space<vmem>>, vector<8x128xf32>,
    %c6_i32 = arith.constant 6 : i32
    %c8_i32_36 = arith.constant 8 : i32
    %72 = arith.muli %c6_i32, %c8_i32_36 : i32
    %73 = tpu.assume_multiple %72, 8 : i32
    %74 = arith.index_cast %73 : i32 to index
    %c0_37 = arith.constant 0 : index
    %75 = vector.load %arg11[%74, %c0_37] : memref<64x128xf32, #tpu.memory_space<vmem>>, vector<8x128xf32>
    %76 = arith.truncf %69 : vector<8x128xf32> to vector<8x128xbf16>
    %cst_38 = arith.constant dense<0.000000e+00> : vector<8x128xf32>
    %77 = tpu.matmul %76, %10, %cst_38 {dimension_numbers = #tpu.dot_dimension_numbers<[1], [0], [0], [1], [0, 0, 1, 1], [], []>} : vector<8x128xbf16>, vector<128x128xbf16>, vector<8x128xf32> -> vector<8x128xf32>
    %78 = arith.addf %75, %77 : vector<8x128xf32>
    %79 = math.tanh %78 : vector<8x128xf32>
    %80 = arith.index_cast %73 : i32 to index
    %c0_39 = arith.constant 0 : index
    %81 = vector.load %arg11[%80, %c0_39] : memref<64x128xf32, #tpu.memory_space<vmem>>, vector<8x128xf32>
    tpu.vector_store %arg11[%80, %c0_39], %79 {strides = array<i32>} : memref<64x128xf32, #tpu.memory_space<vmem>>, vector<8x128xf32>,
    %c7_i32 = arith.constant 7 : i32
    %c8_i32_40 = arith.constant 8 : i32
    %82 = arith.muli %c7_i32, %c8_i32_40 : i32
    %83 = tpu.assume_multiple %82, 8 : i32
    %84 = arith.index_cast %83 : i32 to index
    %c0_41 = arith.constant 0 : index
    %85 = vector.load %arg11[%84, %c0_41] : memref<64x128xf32, #tpu.memory_space<vmem>>, vector<8x128xf32>
    %86 = arith.truncf %79 : vector<8x128xf32> to vector<8x128xbf16>
    %cst_42 = arith.constant dense<0.000000e+00> : vector<8x128xf32>
    %87 = tpu.matmul %86, %10, %cst_42 {dimension_numbers = #tpu.dot_dimension_numbers<[1], [0], [0], [1], [0, 0, 1, 1], [], []>} : vector<8x128xbf16>, vector<128x128xbf16>, vector<8x128xf32> -> vector<8x128xf32>
    %88 = arith.addf %85, %87 : vector<8x128xf32>
    %89 = math.tanh %88 : vector<8x128xf32>
    %90 = arith.index_cast %83 : i32 to index
    %c0_43 = arith.constant 0 : index
    %91 = vector.load %arg11[%90, %c0_43] : memref<64x128xf32, #tpu.memory_space<vmem>>, vector<8x128xf32>
    tpu.vector_store %arg11[%90, %c0_43], %89 {strides = array<i32>} : memref<64x128xf32, #tpu.memory_space<vmem>>, vector<8x128xf32>,
    %c8_i32_44 = arith.constant 8 : i32
    %c0_45 = arith.constant 0 : index
    %c0_46 = arith.constant 0 : index
    %92 = vector.load %arg10[%c0_45, %c0_46] : memref<8x128xf32, #tpu.memory_space<vmem>>, vector<8x128xf32>
    tpu.vector_store %arg10[%c0_45, %c0_46], %89 {strides = array<i32>} : memref<8x128xf32, #tpu.memory_space<vmem>>, vector<8x128xf32>,
    %c0_47 = arith.constant 0 : index
    %c0_48 = arith.constant 0 : index
    %93 = vector.load %arg11[%c0_47, %c0_48] : memref<64x128xf32, #tpu.memory_space<vmem>>, vector<64x128xf32>
    %94 = arith.truncf %93 : vector<64x128xf32> to vector<64x128xbf16>
    %c0_49 = arith.constant 0 : index
    %c0_50 = arith.constant 0 : index
    %95 = vector.load %arg6[%c0_49, %c0_50] : memref<64x128xbf16, #tpu.memory_space<vmem>>, vector<64x128xbf16>
    tpu.vector_store %arg6[%c0_49, %c0_50], %94 {strides = array<i32>} : memref<64x128xbf16, #tpu.memory_space<vmem>>, vector<64x128xbf16>,
    %c0_i32_51 = arith.constant 0 : i32
    %96 = arith.cmpi eq, %arg0, %c0_i32_51 : i32
    %97 = arith.extui %96 : i1 to i32
    %c0_i32_52 = arith.constant 0 : i32
    %98 = arith.cmpi ne, %97, %c0_i32_52 : i32
    scf.if %98 {
      %c0_53 = arith.constant 0 : index
      %c0_54 = arith.constant 0 : index
      %99 = vector.load %arg7[%c0_53, %c0_54] : memref<8x128xf32, #tpu.memory_space<vmem>>, vector<8x128xf32>
      tpu.vector_store %arg7[%c0_53, %c0_54], %89 {strides = array<i32>} : memref<8x128xf32, #tpu.memory_space<vmem>>, vector<8x128xf32>,
    } else {
    }
    return
  }
  func.func @transform_0(%arg0: i32) -> (i32, i32) {
    %c0_i32 = arith.constant 0 : i32
    %c0_i32_0 = arith.constant 0 : i32
    return %arg0, %c0_i32 : i32, i32
  }
  func.func @transform_1(%arg0: i32) -> (i32, i32) {
    %c0_i32 = arith.constant 0 : i32
    %c0_i32_0 = arith.constant 0 : i32
    %c0_i32_1 = arith.constant 0 : i32
    return %c0_i32, %c0_i32_0 : i32, i32
  }
  func.func @transform_2(%arg0: i32) -> (i32, i32) {
    %c0_i32 = arith.constant 0 : i32
    %c0_i32_0 = arith.constant 0 : i32
    %c0_i32_1 = arith.constant 0 : i32
    return %c0_i32, %c0_i32_0 : i32, i32
  }
  func.func @transform_5(%arg0: i32) -> (i32, i32) {
    %c0_i32 = arith.constant 0 : i32
    %c0_i32_0 = arith.constant 0 : i32
    return %arg0, %c0_i32 : i32, i32
  }
  func.func @transform_6(%arg0: i32) -> (i32, i32) {
    %c0_i32 = arith.constant 0 : i32
    %c0_i32_0 = arith.constant 0 : i32
    %c0_i32_1 = arith.constant 0 : i32
    return %c0_i32, %c0_i32_0 : i32, i32
  }
}

</mosaic_0001>

<bundles_post_ra>
// kernel: tpu_custom_call.1
= control target key start
LH: loop header
LB: loop body
LE: loop exit
PB: predicated region body
PF: predicated region fallthrough
CT: control target
= control target key end

     0   :  { %12 = vsyncpa [#allocation8], 0  ;;  %s956_s0 = inlined_call_operand.hbm [shape: bf16[64,128], index: 0, kind: input, shape index: {}]   ;;  %s957_s1 = inlined_call_operand.hbm [shape: f32[8,128], index: 1, kind: input, shape index: {}]   ;;  %s958_s2 = inlined_call_operand.vmem [shape: f32[1,128], index: 2, kind: input, shape index: {}]   ;;  %s959_s3 = inlined_call_operand.hbm [shape: bf16[128,128], index: 3, kind: input, shape index: {}]   ;;  %s960_s4 = inlined_call_operand.hbm [shape: bf16[128,128], index: 4, kind: input, shape index: {}]   ;;  %s961_s5 = inlined_call_operand.hbm [shape: bf16[64,128], index: 5, kind: output, shape index: {0}]   ;;  %s962_s6 = inlined_call_operand.hbm [shape: f32[8,128], index: 6, kind: output, shape index: {1}]  }
   0x1   :  { %13 = vsyncpa [#allocation11], 0 }
   0x2   :  { %14 = vsyncpa [#allocation9], 0 }
   0x3   :  { %15 = vsyncpa [#allocation14], 0  ;;  %s20_s23 = sshll.u32 %s956_s0, 4  ;;  %s826_s24 = smov [#allocation7]   ;;  %s21_s23 = int_to_ptr.hbm [resolvable:$true] %s20_s23 }
   0x4   :  { %s22_s25 = sshll.u32 %s826_s24, 4  ;;  %s34_s28 = sshll.u32 %s957_s1, 4  ;;  %s23_s25 = int_to_ptr.vmem [resolvable:$true] %s22_s25  ;;  %s35_s28 = int_to_ptr.hbm [resolvable:$true] %s34_s28 }
   0x5   :  { %s827_s29 = smov 64   ;;  %s828_s30 = smov 4  }
   0x6   :  { %28 = dma.hbm_to_vmem [thread:$0]  %s21_s23, 512, %s23_s25, [#allocation8], %s827_s29, %s827_s29, %s828_s30  }
   0x7   :  { %s829_s7 = smov [#allocation10]  }
   0x8   :  { %s36_s8 = sshll.u32 %s829_s7, 4  ;;  %s37_s8 = int_to_ptr.vmem [resolvable:$true] %s36_s8 }
   0x9   :  { %39 = dma.hbm_to_vmem [thread:$0]  %s35_s28, 128, %s37_s8, [#allocation11]  }
   0xa   :  { %814 = dma.done.wait [#allocation8], 512  }
   0xb   :  { %815 = vsyncadd [#allocation8], 4294966784 }
   0xc   :  { %816 = dma.done.wait [#allocation11], 128  }
   0xd   :  { %817 = vsyncadd [#allocation11], 4294967168  ;;  %s61_s10 = sshll.u32 %s959_s3, 4  ;;  %s830_s1 = smov [#allocation2]   ;;  %v81_v0 = vld [vmem:[#allocation10] sm:$0xff]  ;;  %s62_s10 = int_to_ptr.hbm [resolvable:$true] %s61_s10 }
   0xe   :  { %s63_s11 = sshll.u32 %s830_s1, 4  ;;  %s75_s14 = sshll.u32 %s960_s4, 4  ;;  %s64_s11 = int_to_ptr.vmem [resolvable:$true] %s63_s11  ;;  %s76_s14 = int_to_ptr.hbm [resolvable:$true] %s75_s14 }
   0xf   :  { %66 = dma.hbm_to_vmem [thread:$0]  %s62_s10, 1024, %s64_s11, [#allocation6] }
  0x10   :  { %s831_s15 = smov [#allocation3]  }
  0x11   :  { %s77_s16 = sshll.u32 %s831_s15, 4  ;;  %s78_s16 = int_to_ptr.vmem [resolvable:$true] %s77_s16 }
  0x12   :  { %80 = dma.hbm_to_vmem [thread:$0]  %s76_s14, 1024, %s78_s16, [#allocation6 + $0x1] }
  0x13   :  { %818 = dma.done.wait [#allocation6], 1024 }
  0x14   :  { %819 = vsyncadd [#allocation6], 4294966272 }
  0x15   :  { %820 = dma.done.wait [#allocation6 + $0x1], 1024 }
  0x16   :  { %821 = vsyncadd [#allocation6 + $0x1], 4294966272  ;;  %v613_v1 = vld [vmem:[#allocation2 + $0x38] sm:$0xff]  ;;  %v612_v3 = vld [vmem:[#allocation2 + $0x30] sm:$0xff]  ;;  %v244_v18 = vpack.c.bf16 %v81_v0, %v81_v0  ;;  %s491_s20 = sshll.u32 %s962_s6, 4  ;;  %s833_s21 = smov [#allocation12]   ;;  %s492_s20 = int_to_ptr.hbm [resolvable:$true] %s491_s20 }
  0x17   :  { %v884_v2 = vld [vmem:[#allocation3 + $0x38] sm:$0xff]  ;;  %189 = vmatpush.bf16.msra.mxu0 %v613_v1  ;;  %v887_v4 = vld [vmem:[#allocation3 + $0x30] sm:$0xff]  ;;  %v611_v5 = vld [vmem:[#allocation2 + $0x28] sm:$0xff]  ;;  %s475_s22 = sshll.u32 %s833_s21, 4  ;;  %s477_s25 = sshll.u32 %s961_s5, 4  ;;  %s476_s22 = int_to_ptr.vmem [resolvable:$true] %s475_s22  ;;  %s478_s25 = int_to_ptr.hbm [resolvable:$true] %s477_s25 }
  0x18   :  { %293 = vmatpush.bf16.msra.mxu1 %v884_v2  ;;  %312 = vmatpush.bf16.msra.mxu2 %v884_v2  ;;  %v892_v6 = vld [vmem:[#allocation3 + $0x28] sm:$0xff]  ;;  %v610_v7 = vld [vmem:[#allocation2 + $0x20] sm:$0xff]  ;;  %v609_v9 = vld [vmem:[#allocation2 + $0x18] sm:$0xff] }
  0x19   :  { %331 = vmatpush.bf16.msra.mxu3 %v884_v2  ;;  %v897_v8 = vld [vmem:[#allocation3 + $0x20] sm:$0xff]  ;;  %v902_v10 = vld [vmem:[#allocation3 + $0x18] sm:$0xff]  ;;  %v608_v11 = vld [vmem:[#allocation2 + $0x10] sm:$0xff] }
  0x1a   :  { %v616_v12 = vld [vmem:[#allocation3 + $0x10] sm:$0xff]  ;;  %v607_v13 = vld [vmem:[#allocation2 + $0x8] sm:$0xff]  ;;  %v606_v15 = vld [vmem:[#allocation2] sm:$0xff] }
  0x1b   :  { %190 = vmatpush.bf16.msra.mxu0 %v612_v3  ;;  %v615_v14 = vld [vmem:[#allocation3 + $0x8] sm:$0xff]  ;;  %v614_v16 = vld [vmem:[#allocation3] sm:$0xff]  ;;  %v604_v43 = vld [vmem:[#allocation7 + $0x10] sm:$0xff] }
  0x1c   :  { %294 = vmatpush.bf16.msra.mxu1 %v887_v4  ;;  %313 = vmatpush.bf16.msra.mxu2 %v887_v4  ;;  %v602_v17 = vld [vmem:[#allocation7] sm:$0xff]  ;;  %v603_v27 = vld [vmem:[#allocation7 + $0x8] sm:$0xff]  ;;  %v605_v52 = vld [vmem:[#allocation7 + $0x18] sm:$0xff] }
  0x1d   :  { %332 = vmatpush.bf16.msra.mxu3 %v887_v4  ;;  %v937_v19 = vld [vmem:[%s958_s2] ss:$0 sm:$0xff]  ;;  %s832_s2 = smov [#allocation13]  }
  0x1e   :  { %s489_s17 = sshll.u32 %s832_s2, 4  ;;  %s490_s17 = int_to_ptr.vmem [resolvable:$true] %s489_s17 }
  0x1f   :  { %191 = vmatpush.bf16.msra.mxu0 %v611_v5 }
  0x20   :  { %295 = vmatpush.bf16.msra.mxu1 %v892_v6  ;;  %314 = vmatpush.bf16.msra.mxu2 %v892_v6 }
  0x21   :  { %333 = vmatpush.bf16.msra.mxu3 %v892_v6 }
  0x23   :  { %192 = vmatpush.bf16.msra.mxu0 %v610_v7 }
  0x24   :  { %296 = vmatpush.bf16.msra.mxu1 %v897_v8  ;;  %315 = vmatpush.bf16.msra.mxu2 %v897_v8 }
  0x25   :  { %334 = vmatpush.bf16.msra.mxu3 %v897_v8 }
  0x27   :  { %193 = vmatpush.bf16.msra.mxu0 %v609_v9 }
  0x28   :  { %297 = vmatpush.bf16.msra.mxu1 %v902_v10  ;;  %316 = vmatpush.bf16.msra.mxu2 %v902_v10 }
  0x29   :  { %335 = vmatpush.bf16.msra.mxu3 %v902_v10 }
  0x2b   :  { %194 = vmatpush.bf16.msra.mxu0 %v608_v11 }
  0x2c   :  { %298 = vmatpush.bf16.msra.mxu1 %v616_v12  ;;  %317 = vmatpush.bf16.msra.mxu2 %v616_v12 }
  0x2d   :  { %336 = vmatpush.bf16.msra.mxu3 %v616_v12 }
  0x2f   :  { %195 = vmatpush.bf16.msra.mxu0 %v607_v13 }
  0x30   :  { %299 = vmatpush.bf16.msra.mxu1 %v615_v14  ;;  %318 = vmatpush.bf16.msra.mxu2 %v615_v14 }
  0x31   :  { %337 = vmatpush.bf16.msra.mxu3 %v615_v14 }
  0x33   :  { %196 = vmatpush.bf16.msra.mxu0 %v606_v15 }
  0x34   :  { %300 = vmatpush.bf16.msra.mxu1 %v614_v16  ;;  %319 = vmatpush.bf16.msra.mxu2 %v614_v16 }
  0x35   :  { %338 = vmatpush.bf16.msra.mxu3 %v614_v16 }
  0x36   :  { %197 = vmatmul.bf16.vlgmr.msra.gmra.mxu0 %v602_v17 }
  0x37   :  { %301 = vmatmul.bf16.vlgmr.msra.gmra.mxu1 %v244_v18  ;;  %407 = vmatpush.bf16.msrb.mxu0 %v884_v2 }
  0x38   :  { %350 = vmatpush.bf16.msrb.mxu1 %v884_v2  ;;  %369 = vmatpush.bf16.msrb.mxu2 %v884_v2 }
  0x39   :  { %388 = vmatpush.bf16.msrb.mxu3 %v884_v2 }
  0x3b   :  { %408 = vmatpush.bf16.msrb.mxu0 %v887_v4 }
  0x3c   :  { %351 = vmatpush.bf16.msrb.mxu1 %v887_v4  ;;  %370 = vmatpush.bf16.msrb.mxu2 %v887_v4 }
  0x3d   :  { %389 = vmatpush.bf16.msrb.mxu3 %v887_v4 }
  0x3f   :  { %409 = vmatpush.bf16.msrb.mxu0 %v892_v6 }
  0x40   :  { %352 = vmatpush.bf16.msrb.mxu1 %v892_v6  ;;  %371 = vmatpush.bf16.msrb.mxu2 %v892_v6 }
  0x41   :  { %390 = vmatpush.bf16.msrb.mxu3 %v892_v6 }
  0x43   :  { %410 = vmatpush.bf16.msrb.mxu0 %v897_v8 }
  0x44   :  { %353 = vmatpush.bf16.msrb.mxu1 %v897_v8  ;;  %372 = vmatpush.bf16.msrb.mxu2 %v897_v8 }
  0x45   :  { %391 = vmatpush.bf16.msrb.mxu3 %v897_v8 }
  0x46   :  { %202 = vmatmul.bf16.gmra.mxu0 %v603_v27 }
  0x47   :  { %411 = vmatpush.bf16.msrb.mxu0 %v902_v10 }
  0x48   :  { %354 = vmatpush.bf16.msrb.mxu1 %v902_v10  ;;  %373 = vmatpush.bf16.msrb.mxu2 %v902_v10 }
  0x49   :  { %392 = vmatpush.bf16.msrb.mxu3 %v902_v10 }
  0x4b   :  { %412 = vmatpush.bf16.msrb.mxu0 %v616_v12 }
  0x4c   :  { %355 = vmatpush.bf16.msrb.mxu1 %v616_v12  ;;  %374 = vmatpush.bf16.msrb.mxu2 %v616_v12 }
  0x4d   :  { %393 = vmatpush.bf16.msrb.mxu3 %v616_v12 }
  0x4f   :  { %413 = vmatpush.bf16.msrb.mxu0 %v615_v14 }
  0x50   :  { %356 = vmatpush.bf16.msrb.mxu1 %v615_v14  ;;  %375 = vmatpush.bf16.msrb.mxu2 %v615_v14 }
  0x51   :  { %394 = vmatpush.bf16.msrb.mxu3 %v615_v14 }
  0x53   :  { %414 = vmatpush.bf16.msrb.mxu0 %v614_v16 }
  0x54   :  { %357 = vmatpush.bf16.msrb.mxu1 %v614_v16  ;;  %376 = vmatpush.bf16.msrb.mxu2 %v614_v16 }
  0x55   :  { %395 = vmatpush.bf16.msrb.mxu3 %v614_v16 }
  0x56   :  { %207 = vmatmul.bf16.gmra.mxu0 %v604_v43 }
  0x58   :  { %426 = vmatpush.bf16.msra.mxu1 %v884_v2 }
  0x5c   :  { %427 = vmatpush.bf16.msra.mxu1 %v887_v4 }
  0x60   :  { %428 = vmatpush.bf16.msra.mxu1 %v892_v6 }
  0x64   :  { %429 = vmatpush.bf16.msra.mxu1 %v897_v8 }
  0x66   :  { %212 = vmatmul.bf16.gmra.mxu0 %v605_v52 }
  0x68   :  { %430 = vmatpush.bf16.msra.mxu1 %v902_v10 }
  0x6c   :  { %431 = vmatpush.bf16.msra.mxu1 %v616_v12 }
  0x70   :  { %432 = vmatpush.bf16.msra.mxu1 %v615_v14 }
  0x74   :  { %433 = vmatpush.bf16.msra.mxu1 %v614_v16 }
  0xb3   :  { %v198_v20 = vpop.f32.mrf.mxu0 }
  0xb4   :  { %v302_v21 = vpop.f32.mrf.mxu1  ;;  %v199_v22 = vadd.f32 %v937_v19, %v198_v20 }
  0xb6   :  { %v306_v23 = vadd.f32 %v302_v21, %v199_v22 }
  0xb8   :  { %654 = vtanh.f32 %v306_v23 }
  0xbb   :  { %v200_v28 = vpop.f32.mrf.mxu0 }
  0xbc   :  { %v304_v24 = vpop.f32.mrf.mxu1  ;;  %v201_v29 = vadd.f32 %v937_v19, %v200_v28 }
  0xbe   :  { %v655_v25 = vpop.eup %654 }
  0xbf   :  { %v311_v26 = vpack.c.bf16 %v655_v25, %v655_v25 }
  0xc1   :  { %320 = vmatmul.bf16.vlgmr.msra.gmra.mxu2 %v311_v26 }
  0xc3   :  { %v203_v36 = vpop.f32.mrf.mxu0 }
  0xc4   :  { %v204_v37 = vadd.f32 %v937_v19, %v203_v36 }
  0xcb   :  { %v205_v44 = vpop.f32.mrf.mxu0 }
  0xcc   :  { %v206_v45 = vadd.f32 %v937_v19, %v205_v44 }
  0xd3   :  { %v208_v53 = vpop.f32.mrf.mxu0 }
  0xd4   :  { %v209_v54 = vadd.f32 %v937_v19, %v208_v53 }
  0xdb   :  { %v210_v60 = vpop.f32.mrf.mxu0 }
  0xdc   :  { %v211_v61 = vadd.f32 %v937_v19, %v210_v60 }
  0xe3   :  { %v213_v4 = vpop.f32.mrf.mxu0 }
  0xe4   :  { %v214_v6 = vadd.f32 %v937_v19, %v213_v4 }
  0xeb   :  { %v215_v5 = vpop.f32.mrf.mxu0 }
  0xec   :  { %v216_v12 = vadd.f32 %v937_v19, %v215_v5 }
 0x144   :  { %v321_v30 = vpop.f32.mrf.mxu2 }
 0x145   :  { %v325_v31 = vadd.f32 %v321_v30, %v201_v29 }
 0x147   :  { %656 = vtanh.f32 %v325_v31 }
 0x14c   :  { %v323_v32 = vpop.f32.mrf.mxu2 }
 0x14d   :  { %v657_v33 = vpop.eup %656 }
 0x14e   :  { %v625_v34 = vpack.c.bf16 %v657_v33, %v655_v25  ;;  %v330_v35 = vpack.c.bf16 %v657_v33, %v657_v33 }
 0x150   :  { %626 = vst [vmem:[#allocation12] sm:$0xff] %v625_v34   ;;  %339 = vmatmul.bf16.vlgmr.msra.gmra.mxu3 %v330_v35 }
 0x1d3   :  { %v340_v38 = vpop.f32.mrf.mxu3 }
 0x1d4   :  { %v344_v39 = vadd.f32 %v340_v38, %v204_v37 }
 0x1d6   :  { %658 = vtanh.f32 %v344_v39 }
 0x1db   :  { %v342_v40 = vpop.f32.mrf.mxu3 }
 0x1dc   :  { %v659_v41 = vpop.eup %658 }
 0x1dd   :  { %v349_v42 = vpack.c.bf16 %v659_v41, %v659_v41 }
 0x1df   :  { %358 = vmatmul.bf16.vlgmr.msrb.gmra.mxu1 %v349_v42 }
 0x25c   :  { %v359_v46 = vpop.f32.mrf.mxu1 }
 0x25d   :  { %v363_v47 = vadd.f32 %v359_v46, %v206_v45 }
 0x25f   :  { %660 = vtanh.f32 %v363_v47 }
 0x264   :  { %v361_v48 = vpop.f32.mrf.mxu1 }
 0x265   :  { %v661_v49 = vpop.eup %660 }
 0x266   :  { %v630_v50 = vpack.c.bf16 %v661_v49, %v659_v41  ;;  %v368_v51 = vpack.c.bf16 %v661_v49, %v661_v49 }
 0x268   :  { %642 = vst [vmem:[#allocation12 + $0x8] sm:$0xff] %v630_v50   ;;  %377 = vmatmul.bf16.vlgmr.msrb.gmra.mxu2 %v368_v51 }
 0x2eb   :  { %v378_v55 = vpop.f32.mrf.mxu2 }
 0x2ec   :  { %v382_v56 = vadd.f32 %v378_v55, %v209_v54 }
 0x2ee   :  { %662 = vtanh.f32 %v382_v56 }
 0x2f3   :  { %v380_v57 = vpop.f32.mrf.mxu2 }
 0x2f4   :  { %v663_v58 = vpop.eup %662 }
 0x2f5   :  { %v387_v59 = vpack.c.bf16 %v663_v58, %v663_v58 }
 0x2f7   :  { %396 = vmatmul.bf16.vlgmr.msrb.gmra.mxu3 %v387_v59 }
 0x37a   :  { %v397_v62 = vpop.f32.mrf.mxu3 }
 0x37b   :  { %v401_v63 = vadd.f32 %v397_v62, %v211_v61 }
 0x37d   :  { %664 = vtanh.f32 %v401_v63 }
 0x382   :  { %v399_v0 = vpop.f32.mrf.mxu3 }
 0x383   :  { %v665_v1 = vpop.eup %664 }
 0x384   :  { %v635_v2 = vpack.c.bf16 %v665_v1, %v663_v58  ;;  %v406_v3 = vpack.c.bf16 %v665_v1, %v665_v1 }
 0x386   :  { %643 = vst [vmem:[#allocation12 + $0x10] sm:$0xff] %v635_v2   ;;  %415 = vmatmul.bf16.vlgmr.msrb.gmra.mxu0 %v406_v3 }
 0x403   :  { %v416_v7 = vpop.f32.mrf.mxu0 }
 0x404   :  { %v420_v8 = vadd.f32 %v416_v7, %v214_v6 }
 0x406   :  { %666 = vtanh.f32 %v420_v8 }
 0x40b   :  { %v418_v9 = vpop.f32.mrf.mxu0 }
 0x40c   :  { %v667_v10 = vpop.eup %666 }
 0x40d   :  { %v425_v11 = vpack.c.bf16 %v667_v10, %v667_v10 }
 0x40f   :  { %434 = vmatmul.bf16.vlgmr.msra.gmra.mxu1 %v425_v11 }
 0x48c   :  { %v435_v13 = vpop.f32.mrf.mxu1 }
 0x48d   :  { %v439_v14 = vadd.f32 %v435_v13, %v216_v12 }
 0x48f   :  { %668 = vtanh.f32 %v439_v14 }
 0x494   :  { %v437_v15 = vpop.f32.mrf.mxu1 }
 0x495   :  { %v669_v16 = vpop.eup %668 }
 0x496   :  { %v640_v17 = vpack.c.bf16 %v669_v16, %v667_v10  ;;  %470 = vst [vmem:[#allocation13] sm:$0xff] %v669_v16 }
 0x497   :  { %494 = dma.vmem_to_hbm [thread:$0]  %s490_s17, 128, %s492_s20, [#allocation14]  }
 0x498   :  { %644 = vst [vmem:[#allocation12 + $0x18] sm:$0xff] %v640_v17  }
 0x499   :  { %483 = dma.vmem_to_hbm [thread:$0]  %s476_s22, 512, %s478_s25, [#allocation9], %s827_s29, %s827_s29, %s828_s30  }
 0x49a   :  { %822 = dma.done.wait [#allocation9], 512  }
 0x49b   :  { %823 = vsyncadd [#allocation9], 4294966784 }
 0x49c   :  { %824 = dma.done.wait [#allocation14], 128  }
 0x49d   :  { %825 = vsyncadd [#allocation14], 4294967168 }
 0x49e   :  { %503 = vsyncpa [#allocation8], 1 }
 0x49f   :  { %504 = vsyncpa [#allocation11], 1 }
 0x4a0   :  { %505 = vsyncpa [#allocation9], 1 }
 0x4a1   :  { %506 = vsyncpa [#allocation14], 1 }
 0x4a2   :  { %507 = vsyncmov [#allocation6] }
 0x4a5   :  { %s508_s5 = vpop.sfrf %507 }
 0x4a6   :  { %p600_p0 = scmp.ne.s32.totalorder %s508_s5, 0 }
 0x4a8   :  { %512 = shalt.err (%p600_p0)  }
 0x4a9   :  { %514 = vsyncmov [#allocation6 + $0x1] }
 0x4ac   :  { %s515_s6 = vpop.sfrf %514 }
 0x4ad   :  { %p601_p1 = scmp.ne.s32.totalorder %s515_s6, 0 }
 0x4af   :  { %519 = shalt.err (%p601_p1)  }

</bundles_post_ra>
